<compile_context>
chip_gen: v7x
topology: tpu7x:2x2x1
jax: 0.10.0
libtpu: 0.0.40
codegen_flags: <defaults>
</compile_context>

<pallas_src>
import functools

import jax
import jax.numpy as jnp
from jax.experimental import pallas as pl
from jax.experimental.pallas import tpu as pltpu


def _fused_kernel(x_ref, wf_ref, mask_ref, gamma_ref, beta_ref, out_ref,
                  buf_ref, patches_ref, sum_ref, sumsq_ref, *,
                  same_path, stride, padding, h, w, out_h, out_w, k, c_in,
                  b_blk, n_total, off0, eps):
    # x_ref      : (B_blk, C_in, H*W) fast path / (B_blk, C_in, H, W) general
    # wf_ref     : (C_out, K*K*C_in)   fused (depthwise x pointwise) weights^T
    # mask_ref   : (K*K, Ho*Wo)        0/1 validity mask per shifted window
    # gamma/beta : (C_out, 1)          BN affine parameters
    # out_ref    : (N, C_out, Ho*Wo)   VMEM-resident output (constant index)
    # buf_ref    : flat halo (B,C,Wbuf) fast path / 2-D halo (B,C,Hp,Wp) general
    # patches_ref: (K*K*C_in, B_blk*Ho*Wo) im2col slab (lane-dense)
    # sum/sumsq  : (C_out, 1)          BN partial-sum accumulators
    hw = out_h * out_w
    i = pl.program_id(0)

    @pl.when(i == 0)
    def _init():
        # Halo / pad regions stay zero for every step (only the interior is
        # rewritten below), so zero the buffer and the accumulators once.
        buf_ref[...] = jnp.zeros_like(buf_ref)
        sum_ref[...] = jnp.zeros_like(sum_ref)
        sumsq_ref[...] = jnp.zeros_like(sumsq_ref)

    # ReLU fused into the staging-buffer fill (relu(0) == 0, so zero padding
    # commutes with the ReLU).
    xr = jnp.maximum(x_ref[...], 0.0)

    if same_path:
        # Fast path (stride == 1, 'same' spatial): x is already lane-dense
        # (H*W on the lane axis).  Place it at lane offset off0 (multiple of
        # 128 -> unmasked store) inside the zero-padded flat buffer; each KxK
        # window is then a plain lane slice, masked at the borders.
        buf_ref[:, :, off0:off0 + hw] = xr
        base = off0 - padding * (w + 1)
        for b in range(b_blk):
            xb = buf_ref[b]                                   # (C_in, Wbuf)
            for kh in range(k):
                for kw in range(k):
                    khw = kh * k + kw
                    s = base + kh * w + kw
                    win = xb[:, s:s + hw] * mask_ref[khw:khw + 1, :]
                    patches_ref[khw * c_in:(khw + 1) * c_in,
                                b * hw:(b + 1) * hw] = win.astype(
                                    patches_ref.dtype)
    else:
        # General path (stride > 1 or non-'same' padding): 2-D halo scratch,
        # strided window slices, per-window spatial flatten.
        buf_ref[:, :, padding:padding + h, padding:padding + w] = xr
        for b in range(b_blk):
            xp = buf_ref[b]                                   # (C_in, Hp, Wp)
            for kh in range(k):
                for kw in range(k):
                    khw = kh * k + kw
                    win = jax.lax.slice(
                        xp, (0, kh, kw),
                        (c_in, kh + (out_h - 1) * stride + 1,
                         kw + (out_w - 1) * stride + 1),
                        (1, stride, stride)).reshape(c_in, hw)
                    patches_ref[khw * c_in:(khw + 1) * c_in,
                                b * hw:(b + 1) * hw] = win.astype(
                                    patches_ref.dtype)

    # Fused depthwise + pointwise conv: one lane-dense MXU matmul,
    # (C_out, K*K*C_in) @ (K*K*C_in, B_blk*Ho*Wo), fp32 accumulation.
    y = jnp.dot(wf_ref[...], patches_ref[...],
                preferred_element_type=jnp.float32)

    # One-pass BN partial statistics, accumulated in VMEM scratch across the
    # (sequential, 'arbitrary') batch grid axis.
    sum_ref[...] += jnp.sum(y, axis=1, keepdims=True)
    sumsq_ref[...] += jnp.sum(y * y, axis=1, keepdims=True)

    # Stage the raw conv output into the resident output block; it stays in
    # VMEM until the final in-place normalization below (no HBM round trip).
    for b in range(b_blk):
        out_ref[i * b_blk + b] = y[:, b * hw:(b + 1) * hw]

    @pl.when(i == pl.num_programs(0) - 1)
    def _finalize():
        inv_n = 1.0 / float(n_total * hw)
        mean = sum_ref[...] * inv_n                               # (C_out, 1)
        var = jnp.maximum(sumsq_ref[...] * inv_n - mean * mean, 0.0)
        scale = gamma_ref[...] * jax.lax.rsqrt(var + eps)
        shift = beta_ref[...] - mean * scale
        out_ref[...] = out_ref[...] * scale[None, :, :] + shift[None, :, :]


def _pick_batch_block(n, per_b_bytes, fixed_bytes, budget_bytes):
    """Largest divisor of n whose per-step VMEM footprint fits the budget."""
    avail = max(budget_bytes - fixed_bytes, per_b_bytes)
    cap = max(1, min(n, avail // max(per_b_bytes, 1)))
    for d in range(int(cap), 0, -1):
        if n % d == 0:
            return d
    return 1


def crelu_conv_bn(x_nchw, dw, pw, gamma, beta, *, stride, padding, eps=1e-5,
                  mxu_dtype=jnp.float32):
    """ReLU -> depthwise KxK -> pointwise 1x1 -> BatchNorm2d (train stats).

    x_nchw: (N, C_in, H, W); dw: (K, K, C_in); pw: (C_in, C_out);
    gamma/beta: (C_out,).  Returns (N, C_out, Ho, Wo) float32.
    """
    n, c_in, h, w = x_nchw.shape
    k = int(dw.shape[0])
    c_out = int(pw.shape[1])
    out_h = (h + 2 * padding - k) // stride + 1
    out_w = (w + 2 * padding - k) // stride + 1
    hw = out_h * out_w

    # Fold depthwise into pointwise: W_f[(kh,kw,c), o] = dw[kh,kw,c] * pw[c,o];
    # kept transposed so the in-kernel matmul is (C_out, KKC) @ (KKC, B*HW).
    wf_t = (dw[:, :, :, None].astype(jnp.float32)
            * pw[None, None, :, :].astype(jnp.float32)
            ).reshape(k * k * c_in, c_out).T.astype(mxu_dtype)

    x = x_nchw.astype(jnp.float32)
    same_path = (stride == 1 and out_h == h and out_w == w)

    if same_path:
        off_need = padding * (w + 1)
        off0 = ((off_need + 127) // 128) * 128 if off_need else 0
        wbuf = off0 + hw + off_need
        # Precomputed 0/1 validity mask per (kh, kw) shifted window.
        p_idx = jnp.arange(hw)
        hh, ww = p_idx // out_w, p_idx % out_w
        rows = []
        for kh in range(k):
            for kw in range(k):
                dh, dwd = kh - padding, kw - padding
                rows.append((hh + dh >= 0) & (hh + dh < h)
                            & (ww + dwd >= 0) & (ww + dwd < w))
        mask = jnp.stack(rows, axis=0).astype(jnp.float32)        # (K*K, HW)
        buf_elems_per_b = c_in * wbuf
    else:
        off0 = 0
        mask = jnp.ones((k * k, hw), jnp.float32)                 # unused
        buf_elems_per_b = c_in * (h + 2 * padding) * (w + 2 * padding)

    itemsize_mxu = jnp.dtype(mxu_dtype).itemsize
    per_b_bytes = (2 * c_in * h * w * 4                 # double-buffered x block
                   + buf_elems_per_b * 4                # flat-halo / halo scratch
                   + k * k * c_in * hw * itemsize_mxu   # im2col patch slab
                   + 2 * c_out * hw * 4)                # y slab + staged output
    fixed_bytes = n * c_out * hw * 4                    # VMEM-resident output
    b_blk = _pick_batch_block(n, per_b_bytes, fixed_bytes,
                              budget_bytes=32 * 1024 * 1024)
    grid = (n // b_blk,)

    if same_path:
        x_in = x.reshape(n, c_in, h * w)            # free row-major reshape
        x_spec = pl.BlockSpec((b_blk, c_in, h * w), lambda i: (i, 0, 0))
        buf_scratch = pltpu.VMEM((b_blk, c_in, wbuf), jnp.float32)
    else:
        x_in = x
        x_spec = pl.BlockSpec((b_blk, c_in, h, w), lambda i: (i, 0, 0, 0))
        buf_scratch = pltpu.VMEM(
            (b_blk, c_in, h + 2 * padding, w + 2 * padding), jnp.float32)

    kernel = functools.partial(
        _fused_kernel, same_path=same_path, stride=stride, padding=padding,
        h=h, w=w, out_h=out_h, out_w=out_w, k=k, c_in=c_in, b_blk=b_blk,
        n_total=n, off0=off0, eps=eps)

    out = pl.pallas_call(
        kernel,
        grid=grid,
        out_shape=jax.ShapeDtypeStruct((n, c_out, hw), jnp.float32),
        in_specs=[
            x_spec,
            pl.BlockSpec((c_out, k * k * c_in), lambda i: (0, 0)),
            pl.BlockSpec((k * k, hw), lambda i: (0, 0)),
            pl.BlockSpec((c_out, 1), lambda i: (0, 0)),
            pl.BlockSpec((c_out, 1), lambda i: (0, 0)),
        ],
        out_specs=pl.BlockSpec((n, c_out, hw), lambda i: (0, 0, 0)),
        scratch_shapes=[
            buf_scratch,
            pltpu.VMEM((k * k * c_in, b_blk * hw), mxu_dtype),
            pltpu.VMEM((c_out, 1), jnp.float32),
            pltpu.VMEM((c_out, 1), jnp.float32),
        ],
        compiler_params=pltpu.CompilerParams(
            # The batch grid axis carries the resident BN-stat accumulators and
            # the resident output block -> 'arbitrary' (sequential).
            dimension_semantics=("arbitrary",),
            # Keeps under the v7x 64 MiB physical VMEM (128 MiB on v5e/v6e).
            vmem_limit_bytes=48 * 1024 * 1024),
    )(x_in, wf_t, mask,
      gamma.reshape(c_out, 1).astype(jnp.float32),
      beta.reshape(c_out, 1).astype(jnp.float32))

    # Output is already channel-major (N, C_out, Ho*Wo): NCHW is a free reshape.
    return out.reshape(n, c_out, out_h, out_w)


def _reference(x_nchw, dw, pw, gamma, beta, *, stride, padding, eps=1e-5):
    """Pure-JAX reference mirroring the PyTorch graph (NCHW)."""
    x = jnp.maximum(x_nchw.astype(jnp.float32), 0.0)
    c_in = x.shape[1]
    dw_oihw = jnp.transpose(dw, (2, 0, 1))[:, None, :, :]        # (C_in,1,K,K)
    y = jax.lax.conv_general_dilated(
        x, dw_oihw, (stride, stride), [(padding, padding), (padding, padding)],
        feature_group_count=c_in, dimension_numbers=("NCHW", "OIHW", "NCHW"))
    pw_oihw = jnp.transpose(pw, (1, 0))[:, :, None, None]        # (C_out,C_in,1,1)
    y = jax.lax.conv_general_dilated(
        y, pw_oihw, (1, 1), [(0, 0), (0, 0)],
        dimension_numbers=("NCHW", "OIHW", "NCHW"))
    mean = jnp.mean(y, axis=(0, 2, 3), keepdims=True)
    var = jnp.mean((y - mean) ** 2, axis=(0, 2, 3), keepdims=True)
    y_hat = (y - mean) * jax.lax.rsqrt(var + eps)
    return y_hat * gamma[None, :, None, None] + beta[None, :, None, None]


if __name__ == "__main__":
    # Module config: CReLUConvBN(C_in=4, C_out=8, kernel_size=3, stride=1, padding=1)
    N, C_IN, H, W = 2, 4, 16, 16
    C_OUT, K, STRIDE, PADDING = 8, 3, 1, 1

    key = jax.random.PRNGKey(0)
    kx, kdw, kpw, kg, kb = jax.random.split(key, 5)

    x = jax.random.normal(kx, (N, C_IN, H, W), jnp.float32)
    dw = jax.random.normal(kdw, (K, K, C_IN), jnp.float32) * 0.1     # depthwise weights
    pw = jax.random.normal(kpw, (C_IN, C_OUT), jnp.float32) * 0.1    # pointwise weights
    gamma = 1.0 + 0.1 * jax.random.normal(kg, (C_OUT,), jnp.float32)  # BN affine
    beta = 0.1 * jax.random.normal(kb, (C_OUT,), jnp.float32)

    out = crelu_conv_bn(x, dw, pw, gamma, beta, stride=STRIDE, padding=PADDING)
    out = jax.block_until_ready(out)

    ref = _reference(x, dw, pw, gamma, beta, stride=STRIDE, padding=PADDING)
    oh = (H + 2 * PADDING - K) // STRIDE + 1
    ow = (W + 2 * PADDING - K) // STRIDE + 1
    assert out.shape == (N, C_OUT, oh, ow), out.shape
    assert jnp.allclose(out, ref, atol=2e-3, rtol=2e-3), float(
        jnp.max(jnp.abs(out - ref)))

    print("KERNEL_OK")
</pallas_src>

<mosaic_0001>
module attributes {stable_mosaic.version = 11 : i64} {
  func.func @_fused_kernel(%arg0: i32, %arg1: memref<2x4x256xf32, #tpu.memory_space<vmem>>, %arg2: memref<8x36xf32, #tpu.memory_space<vmem>>, %arg3: memref<9x256xf32, #tpu.memory_space<vmem>>, %arg4: memref<8x1xf32, #tpu.memory_space<vmem>>, %arg5: memref<8x1xf32, #tpu.memory_space<vmem>>, %arg6: memref<2x8x256xf32, #tpu.memory_space<vmem>>, %arg7: memref<2x4x401xf32, #tpu.memory_space<vmem>>, %arg8: memref<36x512xf32, #tpu.memory_space<vmem>>, %arg9: memref<8x1xf32, #tpu.memory_space<vmem>>, %arg10: memref<8x1xf32, #tpu.memory_space<vmem>>) attributes {dimension_semantics = [#tpu.dimension_semantics<arbitrary>], iteration_bounds = array<i64: 1>, scalar_prefetch = 0 : i64, scratch_operands = 4 : i64, tpu.core_type = #tpu.core_type<tc>, window_params = [{transform_indices = @transform_0, window_bounds = array<i64: 2, 4, 256>}, {pipeline_mode = #tpu.pipeline_mode<synchronous>, transform_indices = @transform_1, window_bounds = array<i64: 8, 36>}, {pipeline_mode = #tpu.pipeline_mode<synchronous>, transform_indices = @transform_2, window_bounds = array<i64: 9, 256>}, {pipeline_mode = #tpu.pipeline_mode<synchronous>, transform_indices = @transform_3, window_bounds = array<i64: 8, 1>}, {pipeline_mode = #tpu.pipeline_mode<synchronous>, transform_indices = @transform_4, window_bounds = array<i64: 8, 1>}, {pipeline_mode = #tpu.pipeline_mode<synchronous>, transform_indices = @transform_5, window_bounds = array<i64: 2, 8, 256>}]} {
    %c0_i32 = arith.constant 0 : i32
    %0 = arith.cmpi eq, %arg0, %c0_i32 : i32
    %1 = arith.extui %0 : i1 to i32
    %c0_i32_0 = arith.constant 0 : i32
    %2 = arith.cmpi ne, %1, %c0_i32_0 : i32
    scf.if %2 {
      %cst_91 = arith.constant 0.000000e+00 : f32
      %132 = vector.broadcast %cst_91 : f32 to vector<2x4x401xf32>
      %c0_92 = arith.constant 0 : index
      %c0_93 = arith.constant 0 : index
      %c0_94 = arith.constant 0 : index
      %133 = vector.load %arg7[%c0_92, %c0_93, %c0_94] : memref<2x4x401xf32, #tpu.memory_space<vmem>>, vector<2x4x401xf32>
      tpu.vector_store %arg7[%c0_92, %c0_93, %c0_94], %132 {strides = array<i32>} : memref<2x4x401xf32, #tpu.memory_space<vmem>>, vector<2x4x401xf32>,
      %cst_95 = arith.constant 0.000000e+00 : f32
      %134 = vector.broadcast %cst_95 : f32 to vector<8x1xf32>
      %c0_96 = arith.constant 0 : index
      %c0_97 = arith.constant 0 : index
      %135 = vector.load %arg9[%c0_96, %c0_97] : memref<8x1xf32, #tpu.memory_space<vmem>>, vector<8x1xf32>
      tpu.vector_store %arg9[%c0_96, %c0_97], %134 {strides = array<i32>} : memref<8x1xf32, #tpu.memory_space<vmem>>, vector<8x1xf32>,
      %cst_98 = arith.constant 0.000000e+00 : f32
      %136 = vector.broadcast %cst_98 : f32 to vector<8x1xf32>
      %c0_99 = arith.constant 0 : index
      %c0_100 = arith.constant 0 : index
      %137 = vector.load %arg10[%c0_99, %c0_100] : memref<8x1xf32, #tpu.memory_space<vmem>>, vector<8x1xf32>
      tpu.vector_store %arg10[%c0_99, %c0_100], %136 {strides = array<i32>} : memref<8x1xf32, #tpu.memory_space<vmem>>, vector<8x1xf32>,
    } else {
    }
    %c0 = arith.constant 0 : index
    %c0_1 = arith.constant 0 : index
    %c0_2 = arith.constant 0 : index
    %3 = vector.load %arg1[%c0, %c0_1, %c0_2] : memref<2x4x256xf32, #tpu.memory_space<vmem>>, vector<2x4x256xf32>
    %cst = arith.constant 0.000000e+00 : f32
    %4 = vector.broadcast %cst : f32 to vector<2x4x256xf32>
    %5 = arith.maximumf %3, %4 : vector<2x4x256xf32>
    %c0_3 = arith.constant 0 : index
    %c0_4 = arith.constant 0 : index
    %c128 = arith.constant 128 : index
    %6 = vector.load %arg7[%c0_3, %c0_4, %c128] : memref<2x4x401xf32, #tpu.memory_space<vmem>>, vector<2x4x256xf32>
    tpu.vector_store %arg7[%c0_3, %c0_4, %c128], %5 {strides = array<i32>} : memref<2x4x401xf32, #tpu.memory_space<vmem>>, vector<2x4x256xf32>,
    %c0_5 = arith.constant 0 : index
    %c0_6 = arith.constant 0 : index
    %c0_7 = arith.constant 0 : index
    %7 = vector.load %arg7[%c0_5, %c0_6, %c0_7] : memref<2x4x401xf32, #tpu.memory_space<vmem>>, vector<1x4x401xf32>
    %8 = vector.shape_cast %7 : vector<1x4x401xf32> to vector<4x401xf32>
    %9 = vector.extract_strided_slice %8 {offsets = [0, 111], sizes = [4, 256], strides = [1, 1]} : vector<4x401xf32> to vector<4x256xf32>
    %c0_8 = arith.constant 0 : index
    %c0_9 = arith.constant 0 : index
    %10 = vector.load %arg3[%c0_8, %c0_9] : memref<9x256xf32, #tpu.memory_space<vmem>>, vector<1x256xf32>
    %11 = vector.broadcast %10 : vector<1x256xf32> to vector<4x256xf32>
    %12 = arith.mulf %9, %11 : vector<4x256xf32>
    %c0_10 = arith.constant 0 : index
    %c0_11 = arith.constant 0 : index
    %13 = vector.load %arg8[%c0_10, %c0_11] : memref<36x512xf32, #tpu.memory_space<vmem>>, vector<4x256xf32>
    tpu.vector_store %arg8[%c0_10, %c0_11], %12 {strides = array<i32>} : memref<36x512xf32, #tpu.memory_space<vmem>>, vector<4x256xf32>,
    %14 = vector.extract_strided_slice %8 {offsets = [0, 112], sizes = [4, 256], strides = [1, 1]} : vector<4x401xf32> to vector<4x256xf32>
    %c1 = arith.constant 1 : index
    %c0_12 = arith.constant 0 : index
    %15 = vector.load %arg3[%c1, %c0_12] : memref<9x256xf32, #tpu.memory_space<vmem>>, vector<1x256xf32>
    %16 = vector.broadcast %15 : vector<1x256xf32> to vector<4x256xf32>
    %17 = arith.mulf %14, %16 : vector<4x256xf32>
    %c4 = arith.constant 4 : index
    %c0_13 = arith.constant 0 : index
    %18 = vector.load %arg8[%c4, %c0_13] : memref<36x512xf32, #tpu.memory_space<vmem>>, vector<4x256xf32>
    tpu.vector_store %arg8[%c4, %c0_13], %17 {strides = array<i32>} : memref<36x512xf32, #tpu.memory_space<vmem>>, vector<4x256xf32>,
    %19 = vector.extract_strided_slice %8 {offsets = [0, 113], sizes = [4, 256], strides = [1, 1]} : vector<4x401xf32> to vector<4x256xf32>
    %c2 = arith.constant 2 : index
    %c0_14 = arith.constant 0 : index
    %20 = vector.load %arg3[%c2, %c0_14] : memref<9x256xf32, #tpu.memory_space<vmem>>, vector<1x256xf32>
    %21 = vector.broadcast %20 : vector<1x256xf32> to vector<4x256xf32>
    %22 = arith.mulf %19, %21 : vector<4x256xf32>
    %c8 = arith.constant 8 : index
    %c0_15 = arith.constant 0 : index
    %23 = vector.load %arg8[%c8, %c0_15] : memref<36x512xf32, #tpu.memory_space<vmem>>, vector<4x256xf32>
    tpu.vector_store %arg8[%c8, %c0_15], %22 {strides = array<i32>} : memref<36x512xf32, #tpu.memory_space<vmem>>, vector<4x256xf32>,
    %24 = vector.extract_strided_slice %8 {offsets = [0, 127], sizes = [4, 256], strides = [1, 1]} : vector<4x401xf32> to vector<4x256xf32>
    %c3 = arith.constant 3 : index
    %c0_16 = arith.constant 0 : index
    %25 = vector.load %arg3[%c3, %c0_16] : memref<9x256xf32, #tpu.memory_space<vmem>>, vector<1x256xf32>
    %26 = vector.broadcast %25 : vector<1x256xf32> to vector<4x256xf32>
    %27 = arith.mulf %24, %26 : vector<4x256xf32>
    %c12 = arith.constant 12 : index
    %c0_17 = arith.constant 0 : index
    %28 = vector.load %arg8[%c12, %c0_17] : memref<36x512xf32, #tpu.memory_space<vmem>>, vector<4x256xf32>
    tpu.vector_store %arg8[%c12, %c0_17], %27 {strides = array<i32>} : memref<36x512xf32, #tpu.memory_space<vmem>>, vector<4x256xf32>,
    %29 = vector.extract_strided_slice %8 {offsets = [0, 128], sizes = [4, 256], strides = [1, 1]} : vector<4x401xf32> to vector<4x256xf32>
    %c4_18 = arith.constant 4 : index
    %c0_19 = arith.constant 0 : index
    %30 = vector.load %arg3[%c4_18, %c0_19] : memref<9x256xf32, #tpu.memory_space<vmem>>, vector<1x256xf32>
    %31 = vector.broadcast %30 : vector<1x256xf32> to vector<4x256xf32>
    %32 = arith.mulf %29, %31 : vector<4x256xf32>
    %c16 = arith.constant 16 : index
    %c0_20 = arith.constant 0 : index
    %33 = vector.load %arg8[%c16, %c0_20] : memref<36x512xf32, #tpu.memory_space<vmem>>, vector<4x256xf32>
    tpu.vector_store %arg8[%c16, %c0_20], %32 {strides = array<i32>} : memref<36x512xf32, #tpu.memory_space<vmem>>, vector<4x256xf32>,
    %34 = vector.extract_strided_slice %8 {offsets = [0, 129], sizes = [4, 256], strides = [1, 1]} : vector<4x401xf32> to vector<4x256xf32>
    %c5 = arith.constant 5 : index
    %c0_21 = arith.constant 0 : index
    %35 = vector.load %arg3[%c5, %c0_21] : memref<9x256xf32, #tpu.memory_space<vmem>>, vector<1x256xf32>
    %36 = vector.broadcast %35 : vector<1x256xf32> to vector<4x256xf32>
    %37 = arith.mulf %34, %36 : vector<4x256xf32>
    %c20 = arith.constant 20 : index
    %c0_22 = arith.constant 0 : index
    %38 = vector.load %arg8[%c20, %c0_22] : memref<36x512xf32, #tpu.memory_space<vmem>>, vector<4x256xf32>
    tpu.vector_store %arg8[%c20, %c0_22], %37 {strides = array<i32>} : memref<36x512xf32, #tpu.memory_space<vmem>>, vector<4x256xf32>,
    %39 = vector.extract_strided_slice %8 {offsets = [0, 143], sizes = [4, 256], strides = [1, 1]} : vector<4x401xf32> to vector<4x256xf32>
    %c6 = arith.constant 6 : index
    %c0_23 = arith.constant 0 : index
    %40 = vector.load %arg3[%c6, %c0_23] : memref<9x256xf32, #tpu.memory_space<vmem>>, vector<1x256xf32>
    %41 = vector.broadcast %40 : vector<1x256xf32> to vector<4x256xf32>
    %42 = arith.mulf %39, %41 : vector<4x256xf32>
    %c24 = arith.constant 24 : index
    %c0_24 = arith.constant 0 : index
    %43 = vector.load %arg8[%c24, %c0_24] : memref<36x512xf32, #tpu.memory_space<vmem>>, vector<4x256xf32>
    tpu.vector_store %arg8[%c24, %c0_24], %42 {strides = array<i32>} : memref<36x512xf32, #tpu.memory_space<vmem>>, vector<4x256xf32>,
    %44 = vector.extract_strided_slice %8 {offsets = [0, 144], sizes = [4, 256], strides = [1, 1]} : vector<4x401xf32> to vector<4x256xf32>
    %c7 = arith.constant 7 : index
    %c0_25 = arith.constant 0 : index
    %45 = vector.load %arg3[%c7, %c0_25] : memref<9x256xf32, #tpu.memory_space<vmem>>, vector<1x256xf32>
    %46 = vector.broadcast %45 : vector<1x256xf32> to vector<4x256xf32>
    %47 = arith.mulf %44, %46 : vector<4x256xf32>
    %c28 = arith.constant 28 : index
    %c0_26 = arith.constant 0 : index
    %48 = vector.load %arg8[%c28, %c0_26] : memref<36x512xf32, #tpu.memory_space<vmem>>, vector<4x256xf32>
    tpu.vector_store %arg8[%c28, %c0_26], %47 {strides = array<i32>} : memref<36x512xf32, #tpu.memory_space<vmem>>, vector<4x256xf32>,
    %49 = vector.extract_strided_slice %8 {offsets = [0, 145], sizes = [4, 256], strides = [1, 1]} : vector<4x401xf32> to vector<4x256xf32>
    %c8_27 = arith.constant 8 : index
    %c0_28 = arith.constant 0 : index
    %50 = vector.load %arg3[%c8_27, %c0_28] : memref<9x256xf32, #tpu.memory_space<vmem>>, vector<1x256xf32>
    %51 = vector.broadcast %50 : vector<1x256xf32> to vector<4x256xf32>
    %52 = arith.mulf %49, %51 : vector<4x256xf32>
    %c32 = arith.constant 32 : index
    %c0_29 = arith.constant 0 : index
    %53 = vector.load %arg8[%c32, %c0_29] : memref<36x512xf32, #tpu.memory_space<vmem>>, vector<4x256xf32>
    tpu.vector_store %arg8[%c32, %c0_29], %52 {strides = array<i32>} : memref<36x512xf32, #tpu.memory_space<vmem>>, vector<4x256xf32>,
    %c1_30 = arith.constant 1 : index
    %c0_31 = arith.constant 0 : index
    %c0_32 = arith.constant 0 : index
    %54 = vector.load %arg7[%c1_30, %c0_31, %c0_32] : memref<2x4x401xf32, #tpu.memory_space<vmem>>, vector<1x4x401xf32>
    %55 = vector.shape_cast %54 : vector<1x4x401xf32> to vector<4x401xf32>
    %56 = vector.extract_strided_slice %55 {offsets = [0, 111], sizes = [4, 256], strides = [1, 1]} : vector<4x401xf32> to vector<4x256xf32>
    %c0_33 = arith.constant 0 : index
    %c0_34 = arith.constant 0 : index
    %57 = vector.load %arg3[%c0_33, %c0_34] : memref<9x256xf32, #tpu.memory_space<vmem>>, vector<1x256xf32>
    %58 = vector.broadcast %57 : vector<1x256xf32> to vector<4x256xf32>
    %59 = arith.mulf %56, %58 : vector<4x256xf32>
    %c0_35 = arith.constant 0 : index
    %c256 = arith.constant 256 : index
    %60 = vector.load %arg8[%c0_35, %c256] : memref<36x512xf32, #tpu.memory_space<vmem>>, vector<4x256xf32>
    tpu.vector_store %arg8[%c0_35, %c256], %59 {strides = array<i32>} : memref<36x512xf32, #tpu.memory_space<vmem>>, vector<4x256xf32>,
    %61 = vector.extract_strided_slice %55 {offsets = [0, 112], sizes = [4, 256], strides = [1, 1]} : vector<4x401xf32> to vector<4x256xf32>
    %c1_36 = arith.constant 1 : index
    %c0_37 = arith.constant 0 : index
    %62 = vector.load %arg3[%c1_36, %c0_37] : memref<9x256xf32, #tpu.memory_space<vmem>>, vector<1x256xf32>
    %63 = vector.broadcast %62 : vector<1x256xf32> to vector<4x256xf32>
    %64 = arith.mulf %61, %63 : vector<4x256xf32>
    %c4_38 = arith.constant 4 : index
    %c256_39 = arith.constant 256 : index
    %65 = vector.load %arg8[%c4_38, %c256_39] : memref<36x512xf32, #tpu.memory_space<vmem>>, vector<4x256xf32>
    tpu.vector_store %arg8[%c4_38, %c256_39], %64 {strides = array<i32>} : memref<36x512xf32, #tpu.memory_space<vmem>>, vector<4x256xf32>,
    %66 = vector.extract_strided_slice %55 {offsets = [0, 113], sizes = [4, 256], strides = [1, 1]} : vector<4x401xf32> to vector<4x256xf32>
    %c2_40 = arith.constant 2 : index
    %c0_41 = arith.constant 0 : index
    %67 = vector.load %arg3[%c2_40, %c0_41] : memref<9x256xf32, #tpu.memory_space<vmem>>, vector<1x256xf32>
    %68 = vector.broadcast %67 : vector<1x256xf32> to vector<4x256xf32>
    %69 = arith.mulf %66, %68 : vector<4x256xf32>
    %c8_42 = arith.constant 8 : index
    %c256_43 = arith.constant 256 : index
    %70 = vector.load %arg8[%c8_42, %c256_43] : memref<36x512xf32, #tpu.memory_space<vmem>>, vector<4x256xf32>
    tpu.vector_store %arg8[%c8_42, %c256_43], %69 {strides = array<i32>} : memref<36x512xf32, #tpu.memory_space<vmem>>, vector<4x256xf32>,
    %71 = vector.extract_strided_slice %55 {offsets = [0, 127], sizes = [4, 256], strides = [1, 1]} : vector<4x401xf32> to vector<4x256xf32>
    %c3_44 = arith.constant 3 : index
    %c0_45 = arith.constant 0 : index
    %72 = vector.load %arg3[%c3_44, %c0_45] : memref<9x256xf32, #tpu.memory_space<vmem>>, vector<1x256xf32>
    %73 = vector.broadcast %72 : vector<1x256xf32> to vector<4x256xf32>
    %74 = arith.mulf %71, %73 : vector<4x256xf32>
    %c12_46 = arith.constant 12 : index
    %c256_47 = arith.constant 256 : index
    %75 = vector.load %arg8[%c12_46, %c256_47] : memref<36x512xf32, #tpu.memory_space<vmem>>, vector<4x256xf32>
    tpu.vector_store %arg8[%c12_46, %c256_47], %74 {strides = array<i32>} : memref<36x512xf32, #tpu.memory_space<vmem>>, vector<4x256xf32>,
    %76 = vector.extract_strided_slice %55 {offsets = [0, 128], sizes = [4, 256], strides = [1, 1]} : vector<4x401xf32> to vector<4x256xf32>
    %c4_48 = arith.constant 4 : index
    %c0_49 = arith.constant 0 : index
    %77 = vector.load %arg3[%c4_48, %c0_49] : memref<9x256xf32, #tpu.memory_space<vmem>>, vector<1x256xf32>
    %78 = vector.broadcast %77 : vector<1x256xf32> to vector<4x256xf32>
    %79 = arith.mulf %76, %78 : vector<4x256xf32>
    %c16_50 = arith.constant 16 : index
    %c256_51 = arith.constant 256 : index
    %80 = vector.load %arg8[%c16_50, %c256_51] : memref<36x512xf32, #tpu.memory_space<vmem>>, vector<4x256xf32>
    tpu.vector_store %arg8[%c16_50, %c256_51], %79 {strides = array<i32>} : memref<36x512xf32, #tpu.memory_space<vmem>>, vector<4x256xf32>,
    %81 = vector.extract_strided_slice %55 {offsets = [0, 129], sizes = [4, 256], strides = [1, 1]} : vector<4x401xf32> to vector<4x256xf32>
    %c5_52 = arith.constant 5 : index
    %c0_53 = arith.constant 0 : index
    %82 = vector.load %arg3[%c5_52, %c0_53] : memref<9x256xf32, #tpu.memory_space<vmem>>, vector<1x256xf32>
    %83 = vector.broadcast %82 : vector<1x256xf32> to vector<4x256xf32>
    %84 = arith.mulf %81, %83 : vector<4x256xf32>
    %c20_54 = arith.constant 20 : index
    %c256_55 = arith.constant 256 : index
    %85 = vector.load %arg8[%c20_54, %c256_55] : memref<36x512xf32, #tpu.memory_space<vmem>>, vector<4x256xf32>
    tpu.vector_store %arg8[%c20_54, %c256_55], %84 {strides = array<i32>} : memref<36x512xf32, #tpu.memory_space<vmem>>, vector<4x256xf32>,
    %86 = vector.extract_strided_slice %55 {offsets = [0, 143], sizes = [4, 256], strides = [1, 1]} : vector<4x401xf32> to vector<4x256xf32>
    %c6_56 = arith.constant 6 : index
    %c0_57 = arith.constant 0 : index
    %87 = vector.load %arg3[%c6_56, %c0_57] : memref<9x256xf32, #tpu.memory_space<vmem>>, vector<1x256xf32>
    %88 = vector.broadcast %87 : vector<1x256xf32> to vector<4x256xf32>
    %89 = arith.mulf %86, %88 : vector<4x256xf32>
    %c24_58 = arith.constant 24 : index
    %c256_59 = arith.constant 256 : index
    %90 = vector.load %arg8[%c24_58, %c256_59] : memref<36x512xf32, #tpu.memory_space<vmem>>, vector<4x256xf32>
    tpu.vector_store %arg8[%c24_58, %c256_59], %89 {strides = array<i32>} : memref<36x512xf32, #tpu.memory_space<vmem>>, vector<4x256xf32>,
    %91 = vector.extract_strided_slice %55 {offsets = [0, 144], sizes = [4, 256], strides = [1, 1]} : vector<4x401xf32> to vector<4x256xf32>
    %c7_60 = arith.constant 7 : index
    %c0_61 = arith.constant 0 : index
    %92 = vector.load %arg3[%c7_60, %c0_61] : memref<9x256xf32, #tpu.memory_space<vmem>>, vector<1x256xf32>
    %93 = vector.broadcast %92 : vector<1x256xf32> to vector<4x256xf32>
    %94 = arith.mulf %91, %93 : vector<4x256xf32>
    %c28_62 = arith.constant 28 : index
    %c256_63 = arith.constant 256 : index
    %95 = vector.load %arg8[%c28_62, %c256_63] : memref<36x512xf32, #tpu.memory_space<vmem>>, vector<4x256xf32>
    tpu.vector_store %arg8[%c28_62, %c256_63], %94 {strides = array<i32>} : memref<36x512xf32, #tpu.memory_space<vmem>>, vector<4x256xf32>,
    %96 = vector.extract_strided_slice %55 {offsets = [0, 145], sizes = [4, 256], strides = [1, 1]} : vector<4x401xf32> to vector<4x256xf32>
    %c8_64 = arith.constant 8 : index
    %c0_65 = arith.constant 0 : index
    %97 = vector.load %arg3[%c8_64, %c0_65] : memref<9x256xf32, #tpu.memory_space<vmem>>, vector<1x256xf32>
    %98 = vector.broadcast %97 : vector<1x256xf32> to vector<4x256xf32>
    %99 = arith.mulf %96, %98 : vector<4x256xf32>
    %c32_66 = arith.constant 32 : index
    %c256_67 = arith.constant 256 : index
    %100 = vector.load %arg8[%c32_66, %c256_67] : memref<36x512xf32, #tpu.memory_space<vmem>>, vector<4x256xf32>
    tpu.vector_store %arg8[%c32_66, %c256_67], %99 {strides = array<i32>} : memref<36x512xf32, #tpu.memory_space<vmem>>, vector<4x256xf32>,
    %c0_68 = arith.constant 0 : index
    %c0_69 = arith.constant 0 : index
    %101 = vector.load %arg2[%c0_68, %c0_69] : memref<8x36xf32, #tpu.memory_space<vmem>>, vector<8x36xf32>
    %c0_70 = arith.constant 0 : index
    %c0_71 = arith.constant 0 : index
    %102 = vector.load %arg8[%c0_70, %c0_71] : memref<36x512xf32, #tpu.memory_space<vmem>>, vector<36x512xf32>
    %cst_72 = arith.constant dense<0.000000e+00> : vector<8x512xf32>
    %103 = tpu.matmul %101, %102, %cst_72 {dimension_numbers = #tpu.dot_dimension_numbers<[1], [0], [0], [1], [0, 0, 1, 1], [], []>} : vector<8x36xf32>, vector<36x512xf32>, vector<8x512xf32> -> vector<8x512xf32>
    %c0_73 = arith.constant 0 : index
    %c0_74 = arith.constant 0 : index
    %104 = vector.load %arg9[%c0_73, %c0_74] : memref<8x1xf32, #tpu.memory_space<vmem>>, vector<8x1xf32>
    %cst_75 = arith.constant dense<0.000000e+00> : vector<8xf32>
    %105 = vector.multi_reduction <add>, %103, %cst_75 [1] : vector<8x512xf32> to vector<8xf32>
    %106 = vector.shape_cast %105 : vector<8xf32> to vector<8x1xf32>
    %107 = arith.addf %104, %106 : vector<8x1xf32>
    %c0_76 = arith.constant 0 : index
    %c0_77 = arith.constant 0 : index
    %108 = vector.load %arg9[%c0_76, %c0_77] : memref<8x1xf32, #tpu.memory_space<vmem>>, vector<8x1xf32>
    tpu.vector_store %arg9[%c0_76, %c0_77], %107 {strides = array<i32>} : memref<8x1xf32, #tpu.memory_space<vmem>>, vector<8x1xf32>,
    %c0_78 = arith.constant 0 : index
    %c0_79 = arith.constant 0 : index
    %109 = vector.load %arg10[%c0_78, %c0_79] : memref<8x1xf32, #tpu.memory_space<vmem>>, vector<8x1xf32>
    %110 = arith.mulf %103, %103 : vector<8x512xf32>
    %cst_80 = arith.constant dense<0.000000e+00> : vector<8xf32>
    %111 = vector.multi_reduction <add>, %110, %cst_80 [1] : vector<8x512xf32> to vector<8xf32>
    %112 = vector.shape_cast %111 : vector<8xf32> to vector<8x1xf32>
    %113 = arith.addf %109, %112 : vector<8x1xf32>
    %c0_81 = arith.constant 0 : index
    %c0_82 = arith.constant 0 : index
    %114 = vector.load %arg10[%c0_81, %c0_82] : memref<8x1xf32, #tpu.memory_space<vmem>>, vector<8x1xf32>
    tpu.vector_store %arg10[%c0_81, %c0_82], %113 {strides = array<i32>} : memref<8x1xf32, #tpu.memory_space<vmem>>, vector<8x1xf32>,
    %115 = vector.extract_strided_slice %103 {offsets = [0, 0], sizes = [8, 256], strides = [1, 1]} : vector<8x512xf32> to vector<8x256xf32>
    %c2_i32 = arith.constant 2 : i32
    %116 = arith.muli %arg0, %c2_i32 : i32
    %c0_i32_83 = arith.constant 0 : i32
    %117 = arith.addi %116, %c0_i32_83 : i32
    %118 = arith.index_cast %117 : i32 to index
    %c0_84 = arith.constant 0 : index
    %c0_85 = arith.constant 0 : index
    %119 = vector.load %arg6[%118, %c0_84, %c0_85] : memref<2x8x256xf32, #tpu.memory_space<vmem>>, vector<1x8x256xf32>
    %120 = vector.shape_cast %119 : vector<1x8x256xf32> to vector<8x256xf32>
    %121 = vector.shape_cast %115 : vector<8x256xf32> to vector<1x8x256xf32>
    tpu.vector_store %arg6[%118, %c0_84, %c0_85], %121 {strides = array<i32>} : memref<2x8x256xf32, #tpu.memory_space<vmem>>, vector<1x8x256xf32>,
    %122 = vector.extract_strided_slice %103 {offsets = [0, 256], sizes = [8, 256], strides = [1, 1]} : vector<8x512xf32> to vector<8x256xf32>
    %c2_i32_86 = arith.constant 2 : i32
    %123 = arith.muli %arg0, %c2_i32_86 : i32
    %c1_i32 = arith.constant 1 : i32
    %124 = arith.addi %123, %c1_i32 : i32
    %125 = arith.index_cast %124 : i32 to index
    %c0_87 = arith.constant 0 : index
    %c0_88 = arith.constant 0 : index
    %126 = vector.load %arg6[%125, %c0_87, %c0_88] : memref<2x8x256xf32, #tpu.memory_space<vmem>>, vector<1x8x256xf32>
    %127 = vector.shape_cast %126 : vector<1x8x256xf32> to vector<8x256xf32>
    %128 = vector.shape_cast %122 : vector<8x256xf32> to vector<1x8x256xf32>
    tpu.vector_store %arg6[%125, %c0_87, %c0_88], %128 {strides = array<i32>} : memref<2x8x256xf32, #tpu.memory_space<vmem>>, vector<1x8x256xf32>,
    %c0_i32_89 = arith.constant 0 : i32
    %129 = arith.cmpi eq, %arg0, %c0_i32_89 : i32
    %130 = arith.extui %129 : i1 to i32
    %c0_i32_90 = arith.constant 0 : i32
    %131 = arith.cmpi ne, %130, %c0_i32_90 : i32
    scf.if %131 {
      %c0_91 = arith.constant 0 : index
      %c0_92 = arith.constant 0 : index
      %132 = vector.load %arg9[%c0_91, %c0_92] : memref<8x1xf32, #tpu.memory_space<vmem>>, vector<8x1xf32>
      %cst_93 = arith.constant 0.001953125 : f32
      %133 = vector.broadcast %cst_93 : f32 to vector<8x1xf32>
      %134 = arith.mulf %132, %133 : vector<8x1xf32>
      %c0_94 = arith.constant 0 : index
      %c0_95 = arith.constant 0 : index
      %135 = vector.load %arg10[%c0_94, %c0_95] : memref<8x1xf32, #tpu.memory_space<vmem>>, vector<8x1xf32>
      %cst_96 = arith.constant 0.001953125 : f32
      %136 = vector.broadcast %cst_96 : f32 to vector<8x1xf32>
      %137 = arith.mulf %135, %136 : vector<8x1xf32>
      %138 = arith.mulf %134, %134 : vector<8x1xf32>
      %139 = arith.subf %137, %138 : vector<8x1xf32>
      %cst_97 = arith.constant 0.000000e+00 : f32
      %140 = vector.broadcast %cst_97 : f32 to vector<8x1xf32>
      %141 = arith.maximumf %139, %140 : vector<8x1xf32>
      %c0_98 = arith.constant 0 : index
      %c0_99 = arith.constant 0 : index
      %142 = vector.load %arg4[%c0_98, %c0_99] : memref<8x1xf32, #tpu.memory_space<vmem>>, vector<8x1xf32>
      %cst_100 = arith.constant 9.99999974E-6 : f32
      %143 = vector.broadcast %cst_100 : f32 to vector<8x1xf32>
      %144 = arith.addf %141, %143 : vector<8x1xf32>
      %145 = math.rsqrt %144 : vector<8x1xf32>
      %146 = arith.mulf %142, %145 : vector<8x1xf32>
      %c0_101 = arith.constant 0 : index
      %c0_102 = arith.constant 0 : index
      %147 = vector.load %arg5[%c0_101, %c0_102] : memref<8x1xf32, #tpu.memory_space<vmem>>, vector<8x1xf32>
      %148 = arith.mulf %134, %146 : vector<8x1xf32>
      %149 = arith.subf %147, %148 : vector<8x1xf32>
      %c0_103 = arith.constant 0 : index
      %c0_104 = arith.constant 0 : index
      %c0_105 = arith.constant 0 : index
      %150 = vector.load %arg6[%c0_103, %c0_104, %c0_105] : memref<2x8x256xf32, #tpu.memory_space<vmem>>, vector<2x8x256xf32>
      %151 = vector.shape_cast %146 : vector<8x1xf32> to vector<1x8x1xf32>
      %152 = vector.broadcast %151 : vector<1x8x1xf32> to vector<2x8x256xf32>
      %153 = arith.mulf %150, %152 : vector<2x8x256xf32>
      %154 = vector.shape_cast %149 : vector<8x1xf32> to vector<1x8x1xf32>
      %155 = vector.broadcast %154 : vector<1x8x1xf32> to vector<2x8x256xf32>
      %156 = arith.addf %153, %155 : vector<2x8x256xf32>
      %c0_106 = arith.constant 0 : index
      %c0_107 = arith.constant 0 : index
      %c0_108 = arith.constant 0 : index
      %157 = vector.load %arg6[%c0_106, %c0_107, %c0_108] : memref<2x8x256xf32, #tpu.memory_space<vmem>>, vector<2x8x256xf32>
      tpu.vector_store %arg6[%c0_106, %c0_107, %c0_108], %156 {strides = array<i32>} : memref<2x8x256xf32, #tpu.memory_space<vmem>>, vector<2x8x256xf32>,
    } else {
    }
    return
  }
  func.func @transform_0(%arg0: i32) -> (i32, i32, i32) {
    %c0_i32 = arith.constant 0 : i32
    %c0_i32_0 = arith.constant 0 : i32
    %c0_i32_1 = arith.constant 0 : i32
    return %arg0, %c0_i32, %c0_i32_0 : i32, i32, i32
  }
  func.func @transform_1(%arg0: i32) -> (i32, i32) {
    %c0_i32 = arith.constant 0 : i32
    %c0_i32_0 = arith.constant 0 : i32
    %c0_i32_1 = arith.constant 0 : i32
    return %c0_i32, %c0_i32_0 : i32, i32
  }
  func.func @transform_2(%arg0: i32) -> (i32, i32) {
    %c0_i32 = arith.constant 0 : i32
    %c0_i32_0 = arith.constant 0 : i32
    %c0_i32_1 = arith.constant 0 : i32
    return %c0_i32, %c0_i32_0 : i32, i32
  }
  func.func @transform_3(%arg0: i32) -> (i32, i32) {
    %c0_i32 = arith.constant 0 : i32
    %c0_i32_0 = arith.constant 0 : i32
    %c0_i32_1 = arith.constant 0 : i32
    return %c0_i32, %c0_i32_0 : i32, i32
  }
  func.func @transform_4(%arg0: i32) -> (i32, i32) {
    %c0_i32 = arith.constant 0 : i32
    %c0_i32_0 = arith.constant 0 : i32
    %c0_i32_1 = arith.constant 0 : i32
    return %c0_i32, %c0_i32_0 : i32, i32
  }
  func.func @transform_5(%arg0: i32) -> (i32, i32, i32) {
    %c0_i32 = arith.constant 0 : i32
    %c0_i32_0 = arith.constant 0 : i32
    %c0_i32_1 = arith.constant 0 : i32
    %c0_i32_2 = arith.constant 0 : i32
    return %c0_i32, %c0_i32_0, %c0_i32_1 : i32, i32, i32
  }
}

</mosaic_0001>

<bundles_post_ra>
// kernel: tpu_custom_call.1
= control target key start
LH: loop header
LB: loop body
LE: loop exit
PB: predicated region body
PF: predicated region fallthrough
CT: control target
= control target key end

     0   :  { %10 = vsyncpa [#allocation7], 0  ;;  %s1351_s0 = inlined_call_operand.vmem [shape: f32[2,4,256], index: 0, kind: input, shape index: {}]   ;;  %s1352_s1 = inlined_call_operand.hbm [shape: f32[8,36], index: 1, kind: input, shape index: {}]   ;;  %s1353_s2 = inlined_call_operand.hbm [shape: f32[9,256], index: 2, kind: input, shape index: {}]   ;;  %s1354_s3 = inlined_call_operand.vmem [shape: f32[8,1], index: 3, kind: input, shape index: {}]   ;;  %s1355_s4 = inlined_call_operand.vmem [shape: f32[8,1], index: 4, kind: input, shape index: {}]   ;;  %s1356_s5 = inlined_call_operand.hbm [shape: f32[2,8,256], index: 5, kind: output, shape index: {}]  }
   0x1   :  { %11 = vsyncpa [#allocation10], 0 }
   0x2   :  { %12 = vsyncpa [#allocation8], 0  ;;  %s1014_s18 = smov [#allocation6]   ;;  %s1015_s20 = smov [#allocation9]  }
   0x3   :  { %s21_s19 = sshll.u32 %s1014_s18, 4  ;;  %s30_s21 = sshll.u32 %s1015_s20, 4  ;;  %s22_s19 = int_to_ptr.vmem [resolvable:$true] %s21_s19  ;;  %s1058_s21 = int_to_ptr.vmem [resolvable:$true] %s30_s21 }
   0x4   :  { %s942_s24 = scalar_lea.hbm %s1352_s1, 128 }
   0x5   :  { %p943_p0 = scmp.ne.s32.totalorder %s1352_s1, %s942_s24  ;;  %p946_p1 = scmp.lt.u32.totalorder %s942_s24, %s1352_s1 }
   0x7   :  { %p948_p2 = pnand %p946_p1, %p943_p0 }
   0x9   :  { %951 = shalt.err (!%p948_p2)
}
   0xa   :  { %s952_s29 = scalar_lea.vmem %s22_s19, 128  ;;  %p957_p4 = scmp.lt.s32.totalorder %s22_s19, %s22_s19 }
   0xb   :  { %p953_p3 = scmp.ne.s32.totalorder %s22_s19, %s952_s29  ;;  %p958_p5 = scmp.lt.s32.totalorder %s952_s29, %s952_s29 }
   0xd   :  { %p959_p6 = por %p958_p5, %p957_p4 }
   0xf   :  { %p960_p7 = pnand %p959_p6, %p953_p3 }
  0x11   :  { %963 = shalt.err (!%p960_p7)
}
  0x12   :  { %24 = dma.hbm_to_vmem [thread:$0]  %s1352_s1, 128, %s22_s19, [#allocation7]  }
  0x13   :  { %s964_s9 = scalar_lea.hbm %s1353_s2, 512 }
  0x14   :  { %p965_p8 = scmp.ne.s32.totalorder %s1353_s2, %s964_s9  ;;  %p968_p9 = scmp.lt.u32.totalorder %s964_s9, %s1353_s2 }
  0x16   :  { %p970_p10 = pnand %p968_p9, %p965_p8 }
  0x18   :  { %973 = shalt.err (!%p970_p10)
}
  0x19   :  { %s974_s14 = scalar_lea.vmem %s1058_s21, 512  ;;  %p979_p12 = scmp.lt.s32.totalorder %s1058_s21, %s1058_s21 }
  0x1a   :  { %p975_p11 = scmp.ne.s32.totalorder %s1058_s21, %s974_s14  ;;  %p980_p13 = scmp.lt.s32.totalorder %s974_s14, %s974_s14 }
  0x1c   :  { %p981_p0 = por %p980_p13, %p979_p12 }
  0x1e   :  { %p982_p1 = pnand %p981_p0, %p975_p11 }
  0x20   :  { %985 = shalt.err (!%p982_p1)
}
  0x21   :  { %s1016_s1 = smov 256   ;;  %s1017_s15 = smov 16  }
  0x22   :  { %36 = dma.hbm_to_vmem [thread:$0]  %s1353_s2, 512, %s1058_s21, [#allocation10], %s1016_s1, %s1016_s1, %s1017_s15  }
  0x23   :  { %1008 = dma.done.wait [#allocation7], 128  }
  0x24   :  { %1009 = vsyncadd [#allocation7], 4294967168 }
  0x25   :  { %1010 = dma.done.wait [#allocation10], 512  }
  0x26   :  { %1011 = vsyncadd [#allocation10], 4294966784  ;;  %v71_v0 = vlaneseq  ;;  %vm52_vm0 = vcmask 1043456   ;;  %v1018_v1 = vmov 0.0   ;;  %vm53_vm1 = vcmask 138244   ;;  %v61_v24 = vld [vmem:[%s1351_s0] sm:$0xff] }
  0x27   :  { %51 = vst [vmem:[#allocation2] sm:$0xff] %v1018_v1  ;;  %56 = vst [vmem:[#allocation2 + $0x10] sm:$0xff] %v1018_v1  ;;  %730 = vmatprep.mubr.f32.mxu0 %v1018_v1  ;;  %801 = vmatprep.mubr.f32.mxu1 %v1018_v1  ;;  %v106_v5 = vld [vmem:[#allocation9 + $0x1] ss:$8 sm:$0x3]  ;;  %v62_v25 = vld [vmem:[%s1351_s0 + $0x8] sm:$0xff] }
  0x28   :  { %v72_v2 = vshrl.u32 %v71_v0, 7  ;;  %vm54_vm2 = vmor %vm53_vm1, %vm52_vm0  ;;  %v69_v6 = vld [vmem:[#allocation9] ss:$8 sm:$0x3]  ;;  %s1019_s21 = smov 112   ;;  %s1020_s22 = smov 111  }
  0x29   :  { %55 = vst.msk [vmem:[#allocation2 + $0x8] sm:$0xff] %vm54_vm2, %v1018_v1  ;;  %57 = vst.msk [vmem:[#allocation2 + $0x18] sm:$0xff] %vm54_vm2, %v1018_v1  ;;  %v181_v11 = vld [vmem:[#allocation9 + $0x3] ss:$8 sm:$0x3]  ;;  %v63_v30 = vmax.f32 %v61_v24, 0.0 }
  0x2a   :  { %v1099_v3 = vsub.s32 0, %v72_v2  ;;  %v1101_v4 = vsub.s32 1, %v72_v2  ;;  %v144_v12 = vld [vmem:[#allocation9 + $0x2] ss:$8 sm:$0x3]  ;;  %v64_v32 = vmax.f32 %v62_v25, 0.0 }
  0x2b   :  { %v359_v17 = vld [vmem:[#allocation9] ss:$8 sm:$0x3]  ;;  %v428_v18 = vld [vmem:[#allocation9 + $0x2] ss:$8 sm:$0x3] }
  0x2c   :  { %v111_v7 = vrot.slane %v106_v5, %v1099_v3  ;;  %v115_v8 = vrot.slane %v106_v5, %v1101_v4  ;;  %v74_v9 = vrot.slane %v69_v6, %v1099_v3  ;;  %v78_v10 = vrot.slane %v69_v6, %v1101_v4  ;;  %v393_v29 = vld [vmem:[#allocation9 + $0x1] ss:$8 sm:$0x3]  ;;  %v462_v31 = vld [vmem:[#allocation9 + $0x3] ss:$8 sm:$0x3] }
  0x2d   :  { %v186_v13 = vrot.slane %v181_v11, %v1099_v3  ;;  %v190_v14 = vrot.slane %v181_v11, %v1101_v4  ;;  %v149_v15 = vrot.slane %v144_v12, %v1099_v3  ;;  %v153_v16 = vrot.slane %v144_v12, %v1101_v4  ;;  %65 = vst [vmem:[#allocation2 + $0x4] sm:$0xff] %v63_v30  ;;  %s1021_s0 = smov 127   ;;  %s1022_s23 = smov 113   ;;  %v219_v47 = vld [vmem:[#allocation9 + $0x4] ss:$8 sm:$0x3] }
  0x2e   :  { %v116_v19 = vcombine.low %v111_v7, %v115_v8  ;;  %v79_v20 = vcombine.low %v74_v9, %v78_v10  ;;  %v364_v22 = vrot.slane %v359_v17, %v1099_v3  ;;  %v368_v23 = vrot.slane %v359_v17, %v1101_v4  ;;  %66 = vst [vmem:[#allocation2 + $0x14] sm:$0xff] %v64_v32  ;;  %v497_v56 = vld [vmem:[#allocation9 + $0x4] ss:$8 sm:$0x3]  ;;  %s1023_s24 = smov 17   ;;  %s1024_s25 = smov 15  }
  0x2f   :  { %v191_v21 = vcombine.low %v186_v13, %v190_v14  ;;  %v154_v26 = vcombine.low %v149_v15, %v153_v16  ;;  %v433_v27 = vrot.slane %v428_v18, %v1099_v3  ;;  %v437_v28 = vrot.slane %v428_v18, %v1101_v4  ;;  %s1025_s26 = smov 1   ;;  %v245_v30 = vld [vmem:[#allocation9 + $0x5] ss:$8 sm:$0x3]  ;;  %s1027_s6 = smov [#allocation11]  }
  0x30   :  { %117 = vrot.lane.b32.xlu1 %v116_v19, %s1019_s21  ;;  %80 = vrot.lane.b32.xlu0 %v79_v20, %s1020_s22  ;;  %v369_v33 = vcombine.low %v364_v22, %v368_v23  ;;  %v398_v34 = vrot.slane %v393_v29, %v1099_v3  ;;  %v402_v35 = vrot.slane %v393_v29, %v1101_v4  ;;  %vm120_vm3 = vcmask 916480   ;;  %s888_s7 = sshll.u32 %s1027_s6, 4  ;;  %s889_s7 = int_to_ptr.vmem [resolvable:$true] %s888_s7 }
  0x31   :  { %v438_v36 = vcombine.low %v433_v27, %v437_v28  ;;  %v467_v37 = vrot.slane %v462_v31, %v1099_v3  ;;  %v471_v38 = vrot.slane %v462_v31, %v1101_v4  ;;  %v224_v48 = vrot.slane %v219_v47, %v1099_v3  ;;  %p991_p3 = scmp.lt.s32.totalorder %s889_s7, %s889_s7 }
  0x32   :  { %v403_v39 = vcombine.low %v398_v34, %v402_v35  ;;  %v228_v49 = vrot.slane %v219_v47, %v1101_v4  ;;  %v502_v57 = vrot.slane %v497_v56, %v1099_v3  ;;  %v506_v58 = vrot.slane %v497_v56, %v1101_v4 }
  0x33   :  { %v472_v40 = vcombine.low %v467_v37, %v471_v38  ;;  %vm195_vm4 = vcmask 1039360   ;;  %vm83_vm5 = vcmask 908288   ;;  %vm58_vm6 = vcmask 7168   ;;  %v301_v38 = vld [vmem:[#allocation9 + $0x7] ss:$8 sm:$0x3] }
  0x34   :  { %192 = vrot.lane.b32.xlu1 %v191_v21, %s1021_s0  ;;  %155 = vrot.lane.b32.xlu0 %v154_v26, %s1022_s23  ;;  %v1129_v41 = vld [vmem:[#allocation2 + $0x8] sm:$0xff]  ;;  %v1131_v42 = vld [vmem:[#allocation2] sm:$0xff]  ;;  %v236_v50 = vcombine.low %v224_v48, %v228_v49  ;;  %v513_v59 = vcombine.low %v502_v57, %v506_v58  ;;  %vm158_vm7 = vcmask 924672   ;;  %59 = vst.msk [vmem:[#allocation4] sm:$0xff] %vm58_vm6, %v1018_v1  ;;  %60 = vst.msk [vmem:[#allocation5] sm:$0xff] %vm58_vm6, %v1018_v1  ;;  %vm136_vm8 = vcmask 130048  }
  0x35   :  { %v1141_v43 = vld [vmem:[#allocation2 + $0x18] sm:$0xff]  ;;  %v1143_v44 = vld [vmem:[#allocation2 + $0x10] sm:$0xff]  ;;  %v232_v45 = vrot.slane %v1129_v41, 4  ;;  %v231_v46 = vrot.slane %v1131_v42, 4  ;;  %v254_v37 = vrot.slane %v245_v30, %v1101_v4  ;;  %v306_v49 = vrot.slane %v301_v38, %v1099_v3 }
  0x36   :  { %v510_v54 = vrot.slane %v1141_v43, 4  ;;  %v509_v55 = vrot.slane %v1143_v44, 4  ;;  %v273_v21 = vld [vmem:[#allocation9 + $0x6] ss:$8 sm:$0x3]  ;;  %v310_v56 = vrot.slane %v301_v38, %v1101_v4  ;;  %vm98_vm9 = vcmask 138240  }
  0x37   :  { %v234_v51 = vsel %vm52_vm0, %v231_v46, %v232_v45  ;;  %v278_v26 = vrot.slane %v273_v21, %v1099_v3  ;;  %v282_v27 = vrot.slane %v273_v21, %v1101_v4  ;;  %vm173_vm10 = vcmask 121856  }
  0x38   :  { %370 = vrot.lane.b32.xlu0 %v369_v33, %s1020_s22  ;;  %439 = vrot.lane.b32.xlu1 %v438_v36, %s1022_s23  ;;  %v238_v52 = vmul.f32 %v236_v50, %v234_v51  ;;  %v511_v60 = vsel %vm52_vm0, %v509_v55, %v510_v54  ;;  %v250_v36 = vrot.slane %v245_v30, %v1099_v3  ;;  %v548_v50 = vld [vmem:[#allocation9 + $0x6] ss:$8 sm:$0x3]  ;;  %vm650_vm11 = vcmask 293888  }
  0x39   :  { %v515_v61 = vmul.f32 %v513_v59, %v511_v60  ;;  %v292_v34 = vcombine.low %v278_v26, %v282_v27  ;;  %v553_v60 = vrot.slane %v548_v50, %v1099_v3 }
  0x3a   :  { %v240_v53 = vcombine.high %v238_v52, %v238_v52  ;;  %242 = vst [vmem:[#allocation3 + $0x40] sm:$0xf] %v238_v52  ;;  %v264_v54 = vcombine.low %v250_v36, %v254_v37 }
  0x3b   :  { %v517_v62 = vcombine.high %v515_v61, %v515_v61  ;;  %519 = vst [vmem:[#allocation3 + $0x50] sm:$0xf] %v515_v61 }
  0x3c   :  { %404 = vrot.lane.b32.xlu0 %v403_v39, %s1019_s21  ;;  %473 = vrot.lane.b32.xlu1 %v472_v40, %s1021_s0  ;;  %243 = vst [vmem:[#allocation3 + $0x48] sm:$0xf] %v240_v53 }
  0x3d   :  { %520 = vst [vmem:[#allocation3 + $0x58] sm:$0xf] %v517_v62 }
  0x40   :  { %285 = vrot.lane.b32.xlu1 %v1129_v41, %s1022_s23  ;;  %283 = vrot.lane.b32.xlu0 %v1131_v42, %s1022_s23 }
  0x44   :  { %257 = vrot.lane.b32.xlu1 %v1129_v41, %s1021_s0  ;;  %255 = vrot.lane.b32.xlu0 %v1131_v42, %s1021_s0 }
  0x48   :  { %313 = vrot.lane.b32.xlu1 %v1129_v41, %s1019_s21  ;;  %311 = vrot.lane.b32.xlu0 %v1131_v42, %s1019_s21 }
  0x4c   :  { %560 = vrot.lane.b32.xlu1 %v1141_v43, %s1022_s23  ;;  %558 = vrot.lane.b32.xlu0 %v1143_v44, %s1022_s23 }
  0x50   :  { %533 = vrot.lane.b32.xlu1 %v1141_v43, %s1021_s0  ;;  %531 = vrot.lane.b32.xlu0 %v1143_v44, %s1021_s0 }
  0x54   :  { %587 = vrot.lane.b32.xlu1 %v1141_v43, %s1019_s21  ;;  %585 = vrot.lane.b32.xlu0 %v1143_v44, %s1019_s21 }
  0x58   :  { %341 = vrot.lane.b32.xlu1 %v1129_v41, %s1020_s22  ;;  %339 = vrot.lane.b32.xlu0 %v1131_v42, %s1020_s22 }
  0xa2   :  { %v118_v63 = vpop.permute.xlu1 %117  ;;  %v81_v0 = vpop.permute.xlu0 %80 }
  0xa3   :  { %v119_v2 = vrot.slane %v118_v63, 4  ;;  %v82_v5 = vrot.slane %v81_v0, 4 }
  0xa5   :  { %v121_v6 = vsel %vm120_vm3, %v119_v2, %v118_v63  ;;  %v88_v7 = vmul.f32 %v82_v5, %v1129_v41  ;;  %v84_v18 = vsel %vm83_vm5, %v82_v5, %v81_v0  ;;  %v125_v31 = vmul.f32 %v119_v2, %v1129_v41  ;;  %v521_v2 = vld [vmem:[#allocation9 + $0x5] ss:$8 sm:$0x3] }
  0xa6   :  { %v193_v8 = vpop.permute.xlu1 %192  ;;  %v156_v9 = vpop.permute.xlu0 %155  ;;  %v1170_v10 = vmul.f32 %v121_v6, %v1131_v42  ;;  %v1198_v23 = vmul.f32 %v84_v18, %v1131_v42  ;;  %v526_v21 = vrot.slane %v521_v2, %v1099_v3 }
  0xa7   :  { %v194_v11 = vrot.slane %v193_v8, 4  ;;  %v157_v12 = vrot.slane %v156_v9, 4  ;;  %96 = vrot.lane.b32.xlu1 %v88_v7, %s1023_s24  ;;  %v129_v47 = vcombine.low %v125_v31, %v125_v31 }
  0xa8   :  { %132 = vrot.lane.b32.xlu0 %v1170_v10, %s1017_s15 }
  0xa9   :  { %v196_v13 = vsel %vm195_vm4, %v194_v11, %v193_v8  ;;  %v163_v14 = vmul.f32 %v157_v12, %v1129_v41  ;;  %v159_v28 = vsel %vm158_vm7, %v157_v12, %v156_v9  ;;  %v320_v8 = vcombine.low %v306_v49, %v310_v56 }
  0xaa   :  { %v1178_v15 = vmul.f32 %v196_v13, %v1131_v42  ;;  %v1180_v16 = vpop.permute.xlu0 %370  ;;  %v1182_v17 = vpop.permute.xlu1 %439  ;;  %v1211_v32 = vmul.f32 %v159_v28, %v1131_v42  ;;  %v200_v42 = vmul.f32 %v194_v11, %v1129_v41  ;;  %v557_v11 = vrot.slane %v548_v50, %v1101_v4  ;;  %v329_v50 = vld [vmem:[#allocation9 + $0x10] ss:$8 sm:$0x3] }
  0xab   :  { %v372_v19 = vrot.slane %v1180_v16, 4  ;;  %171 = vrot.lane.b32.xlu1 %v163_v14, %s1024_s25  ;;  %v441_v20 = vrot.slane %v1182_v17, 4 }
  0xac   :  { %207 = vrot.lane.b32.xlu0 %v1178_v15, %s1025_s26  ;;  %v204_v61 = vcombine.low %v200_v42, %v200_v42  ;;  %v567_v28 = vcombine.low %v553_v60, %v557_v11 }
  0xad   :  { %v377_v22 = vmul.f32 %v372_v19, %v1141_v43  ;;  %v446_v29 = vmul.f32 %v441_v20, %v1141_v43  ;;  %v373_v12 = vsel %vm83_vm5, %v372_v19, %v1180_v16  ;;  %v442_v30 = vsel %vm158_vm7, %v441_v20, %v1182_v17 }
  0xae   :  { %v405_v24 = vpop.permute.xlu0 %404  ;;  %v474_v25 = vpop.permute.xlu1 %473  ;;  %v1250_v16 = vmul.f32 %v373_v12, %v1143_v44 }
  0xaf   :  { %385 = vrot.lane.b32.xlu1 %v377_v22, %s1023_s24  ;;  %v406_v1 = vrot.slane %v405_v24, 4  ;;  %v475_v40 = vrot.slane %v474_v25, 4 }
  0xb0   :  { %92 = vrot.lane.b32.xlu0 %v1198_v23, %s1023_s24 }
  0xb1   :  { %v407_v39 = vsel %vm120_vm3, %v406_v1, %v405_v24  ;;  %v476_v57 = vsel %vm195_vm4, %v475_v40, %v474_v25  ;;  %v411_v62 = vmul.f32 %v406_v1, %v1141_v43  ;;  %v480_v22 = vmul.f32 %v475_v40, %v1141_v43 }
  0xb2   :  { %v286_v33 = vpop.permute.xlu1 %285  ;;  %v284_v35 = vpop.permute.xlu0 %283  ;;  %v1223_v51 = vmul.f32 %v407_v39, %v1143_v44  ;;  %v1235_v5 = vmul.f32 %v476_v57, %v1143_v44  ;;  %v530_v1 = vrot.slane %v521_v2, %v1101_v4  ;;  %v445_v39 = vmul.f32 %v442_v30, %v1143_v44 }
  0xb3   :  { %454 = vrot.lane.b32.xlu1 %v446_v29, %s1024_s25  ;;  %v288_v45 = vrot.slane %v286_v33, 4  ;;  %v287_v46 = vrot.slane %v284_v35, 4  ;;  %v415_v24 = vcombine.low %v411_v62, %v411_v62  ;;  %v575_v35 = vld [vmem:[#allocation9 + $0x7] ss:$8 sm:$0x3]  ;;  %v484_v36 = vcombine.low %v480_v22, %v480_v22 }
  0xb4   :  { %167 = vrot.lane.b32.xlu0 %v1211_v32, %s1024_s25  ;;  %v166_v2 = vcombine.high %v1211_v32, %v1211_v32 }
  0xb5   :  { %v289_v48 = vsel %vm52_vm0, %v287_v46, %v288_v45  ;;  %v580_v45 = vrot.slane %v575_v35, %v1099_v3  ;;  %v584_v46 = vrot.slane %v575_v35, %v1101_v4 }
  0xb6   :  { %v290_v52 = vsel %vm158_vm7, %v289_v48, %v286_v33  ;;  %v258_v53 = vpop.permute.xlu1 %257  ;;  %v256_v55 = vpop.permute.xlu0 %255  ;;  %v540_v48 = vcombine.low %v526_v21, %v530_v1 }
  0xb7   :  { %134 = vrot.lane.b32.xlu1 %v129_v47, %s1017_s15  ;;  %v294_v41 = vmul.f32 %v292_v34, %v290_v52  ;;  %v260_v58 = vrot.slane %v258_v53, 4  ;;  %v259_v59 = vrot.slane %v256_v55, 4  ;;  %v128_v52 = vcombine.low %v1170_v10, %v1170_v10 }
  0xb8   :  { %418 = vrot.lane.b32.xlu0 %v1223_v51, %s1017_s15  ;;  %v91_v55 = vcombine.high %v1198_v23, %v1198_v23  ;;  %v203_v23 = vcombine.low %v1178_v15, %v1178_v15  ;;  %v414_v15 = vcombine.low %v1223_v51, %v1223_v51  ;;  %v449_v51 = vcombine.high %v445_v39, %v445_v39 }
  0xb9   :  { %v296_v63 = vcombine.high %v294_v41, %v294_v41  ;;  %298 = vst [vmem:[#allocation3 + $0x60] sm:$0xf] %v294_v41  ;;  %v261_v0 = vsel %vm52_vm0, %v259_v59, %v260_v58  ;;  %v334_v58 = vrot.slane %v329_v50, %v1099_v3  ;;  %v338_v59 = vrot.slane %v329_v50, %v1101_v4 }
  0xba   :  { %v262_v6 = vsel %vm195_vm4, %v261_v0, %v258_v53  ;;  %v314_v7 = vpop.permute.xlu1 %313  ;;  %v312_v9 = vpop.permute.xlu0 %311 }
  0xbb   :  { %209 = vrot.lane.b32.xlu1 %v204_v61, %s1025_s26  ;;  %299 = vst [vmem:[#allocation3 + $0x68] sm:$0xf] %v296_v63  ;;  %v266_v13 = vmul.f32 %v264_v54, %v262_v6  ;;  %v316_v14 = vrot.slane %v314_v7, 4  ;;  %v315_v18 = vrot.slane %v312_v9, 4  ;;  %v594_v61 = vcombine.low %v580_v45, %v584_v46 }
  0xbc   :  { %487 = vrot.lane.b32.xlu0 %v1235_v5, %s1025_s26  ;;  %v348_v12 = vcombine.low %v334_v58, %v338_v59 }
  0xbd   :  { %v268_v25 = vcombine.low %v266_v13, %v266_v13  ;;  %271 = vst [vmem:[#allocation3 + $0x48] sm:$0xf0] %v266_v13  ;;  %v317_v26 = vsel %vm52_vm0, %v315_v18, %v316_v14  ;;  %v380_v18 = vcombine.high %v1250_v16, %v1250_v16 }
  0xbe   :  { %v318_v19 = vsel %vm120_vm3, %v317_v26, %v314_v7  ;;  %v561_v27 = vpop.permute.xlu1 %560  ;;  %v559_v29 = vpop.permute.xlu0 %558 }
  0xbf   :  { %420 = vrot.lane.b32.xlu1 %v415_v24, %s1017_s15  ;;  %270 = vst [vmem:[#allocation3 + $0x40] sm:$0xf0] %v268_v25  ;;  %v322_v31 = vmul.f32 %v320_v8, %v318_v19  ;;  %v563_v33 = vrot.slane %v561_v27, 4  ;;  %v562_v34 = vrot.slane %v559_v29, 4  ;;  %v483_v24 = vcombine.low %v1235_v5, %v1235_v5 }
  0xc0   :  { %381 = vrot.lane.b32.xlu0 %v1250_v16, %s1023_s24 }
  0xc1   :  { %v324_v37 = vcombine.low %v322_v31, %v322_v31  ;;  %327 = vst [vmem:[#allocation3 + $0x68] sm:$0xf0] %v322_v31  ;;  %v564_v38 = vsel %vm52_vm0, %v562_v34, %v563_v33 }
  0xc2   :  { %v565_v40 = vsel %vm158_vm7, %v564_v38, %v561_v27  ;;  %v534_v17 = vpop.permute.xlu1 %533  ;;  %v532_v20 = vpop.permute.xlu0 %531 }
  0xc3   :  { %489 = vrot.lane.b32.xlu1 %v484_v36, %s1025_s26  ;;  %326 = vst [vmem:[#allocation3 + $0x60] sm:$0xf0] %v324_v37  ;;  %v569_v42 = vmul.f32 %v567_v28, %v565_v40  ;;  %v536_v47 = vrot.slane %v534_v17, 4  ;;  %v535_v49 = vrot.slane %v532_v20, 4 }
  0xc4   :  { %450 = vrot.lane.b32.xlu0 %v445_v39, %s1024_s25 }
  0xc5   :  { %v571_v53 = vcombine.high %v569_v42, %v569_v42  ;;  %573 = vst [vmem:[#allocation3 + $0x70] sm:$0xf] %v569_v42  ;;  %v537_v54 = vsel %vm52_vm0, %v535_v49, %v536_v47 }
  0xc6   :  { %v538_v56 = vsel %vm195_vm4, %v537_v54, %v534_v17  ;;  %v588_v57 = vpop.permute.xlu1 %587  ;;  %v586_v41 = vpop.permute.xlu0 %585 }
  0xc7   :  { %130 = vrot.lane.b32.xlu1 %v128_v52, %s1017_s15  ;;  %574 = vst [vmem:[#allocation3 + $0x78] sm:$0xf] %v571_v53  ;;  %v542_v60 = vmul.f32 %v540_v48, %v538_v56  ;;  %v590_v10 = vrot.slane %v588_v57, 4  ;;  %v589_v62 = vrot.slane %v586_v41, 4 }
  0xc8   :  { %94 = vrot.lane.b32.xlu0 %v91_v55, %s1023_s24  ;;  %v602_v41 = vld [vmem:[#allocation9 + $0x10] ss:$8 sm:$0x3] }
  0xc9   :  { %v544_v63 = vcombine.low %v542_v60, %v542_v60  ;;  %547 = vst [vmem:[#allocation3 + $0x58] sm:$0xf0] %v542_v60  ;;  %v591_v0 = vsel %vm52_vm0, %v589_v62, %v590_v10  ;;  %v643_v62 = vld [vmem:[#allocation3 + $0x68] sm:$0xff] }
  0xca   :  { %v592_v6 = vsel %vm120_vm3, %v591_v0, %v588_v57  ;;  %v342_v7 = vpop.permute.xlu1 %341  ;;  %v340_v8 = vpop.permute.xlu0 %339 }
  0xcb   :  { %205 = vrot.lane.b32.xlu1 %v203_v23, %s1025_s26  ;;  %546 = vst [vmem:[#allocation3 + $0x50] sm:$0xf0] %v544_v63  ;;  %v596_v9 = vmul.f32 %v594_v61, %v592_v6  ;;  %v344_v11 = vrot.slane %v342_v7, 4  ;;  %v343_v13 = vrot.slane %v340_v8, 4  ;;  %v639_v61 = vld [vmem:[#allocation3 + $0x48] sm:$0xff]  ;;  %v611_v6 = vrot.slane %v602_v41, %v1101_v4 }
  0xcc   :  { %169 = vrot.lane.b32.xlu0 %v166_v2, %s1024_s25  ;;  %v607_v2 = vrot.slane %v602_v41, %v1099_v3 }
  0xcd   :  { %v598_v14 = vcombine.low %v596_v9, %v596_v9  ;;  %601 = vst [vmem:[#allocation3 + $0x78] sm:$0xf0] %v596_v9  ;;  %v345_v32 = vsel %vm52_vm0, %v343_v13, %v344_v11 }
  0xce   :  { %v346_v21 = vsel %vm83_vm5, %v345_v32, %v342_v7  ;;  %v638_v32 = vld [vmem:[#allocation3 + $0x40] sm:$0xff] }
  0xcf   :  { %416 = vrot.lane.b32.xlu1 %v414_v15, %s1017_s15  ;;  %600 = vst [vmem:[#allocation3 + $0x70] sm:$0xf0] %v598_v14  ;;  %v350_v22 = vmul.f32 %v348_v12, %v346_v21  ;;  %v912_v14 = vpack.c.bf16 %v643_v62, %v639_v61  ;;  %v621_v21 = vcombine.low %v607_v2, %v611_v6  ;;  %v850_v6 = vld [vmem:[%s1354_s3] sm:$0xff]  ;;  %s986_s3 = scalar_lea.vmem %s889_s7, 512 }
  0xd0   :  { %383 = vrot.lane.b32.xlu0 %v380_v18, %s1023_s24  ;;  %v642_v18 = vld [vmem:[#allocation3 + $0x60] sm:$0xff]  ;;  %p987_p2 = scmp.ne.s32.totalorder %s889_s7, %s986_s3  ;;  %p992_p4 = scmp.lt.s32.totalorder %s986_s3, %s986_s3 }
  0xd1   :  { %v352_v25 = vcombine.high %v350_v22, %v350_v22  ;;  %354 = vst [vmem:[#allocation3 + $0x80] sm:$0xf] %v350_v22  ;;  %v914_v4 = vpack.c.bf16 %v642_v18, %v638_v32 }
  0xd2   :  { %p993_p5 = por %p992_p4, %p991_p3 }
  0xd3   :  { %485 = vrot.lane.b32.xlu1 %v483_v24, %s1025_s26  ;;  %355 = vst [vmem:[#allocation3 + $0x88] sm:$0xf] %v352_v25  ;;  %v641_v24 = vld [vmem:[#allocation3 + $0x58] sm:$0xff] }
  0xd4   :  { %452 = vrot.lane.b32.xlu0 %v449_v51, %s1024_s25  ;;  %p994_p6 = pnand %p993_p5, %p987_p2 }
  0xd7   :  { %614 = vrot.lane.b32.xlu1 %v1141_v43, %s1020_s22 }
  0xd8   :  { %612 = vrot.lane.b32.xlu0 %v1143_v44, %s1020_s22 }
  0xda   :  { %v647_v51 = vld [vmem:[#allocation3 + $0x88] sm:$0xf] }
 0x119   :  { %v97_v26 = vpop.permute.xlu1 %96 }
 0x11a   :  { %v133_v16 = vpop.permute.xlu0 %132 }
 0x11d   :  { %v172_v19 = vpop.permute.xlu1 %171 }
 0x11e   :  { %v208_v27 = vpop.permute.xlu0 %207 }
 0x121   :  { %v386_v28 = vpop.permute.xlu1 %385 }
 0x122   :  { %v93_v5 = vpop.permute.xlu0 %92 }
 0x125   :  { %v455_v29 = vpop.permute.xlu1 %454 }
 0x126   :  { %v168_v1 = vpop.permute.xlu0 %167 }
 0x129   :  { %v135_v30 = vpop.permute.xlu1 %134 }
 0x12a   :  { %v138_v31 = vsel %vm136_vm8, %v133_v16, %v135_v30  ;;  %v419_v33 = vpop.permute.xlu0 %418 }
 0x12b   :  { %142 = vst [vmem:[#allocation3 + $0x8] sm:$0xf0] %v138_v31  ;;  %v629_v31 = vld [vmem:[#allocation6] sm:$0xff] }
 0x12d   :  { %v210_v34 = vpop.permute.xlu1 %209 }
 0x12e   :  { %v213_v43 = vsel %vm58_vm6, %v208_v27, %v210_v34  ;;  %v488_v35 = vpop.permute.xlu0 %487 }
 0x12f   :  { %217 = vst [vmem:[#allocation3 + $0x28] sm:$0xf0] %v213_v43  ;;  %v640_v43 = vld [vmem:[#allocation3 + $0x50] sm:$0xff] }
 0x131   :  { %v421_v44 = vpop.permute.xlu1 %420 }
 0x132   :  { %v423_v36 = vsel %vm136_vm8, %v419_v33, %v421_v44  ;;  %v382_v37 = vpop.permute.xlu0 %381 }
 0x133   :  { %427 = vst [vmem:[#allocation3 + $0x18] sm:$0xf0] %v423_v36 }
 0x135   :  { %v490_v38 = vpop.permute.xlu1 %489 }
 0x136   :  { %v492_v39 = vsel %vm58_vm6, %v488_v35, %v490_v38  ;;  %v451_v40 = vpop.permute.xlu0 %450 }
 0x137   :  { %496 = vst [vmem:[#allocation3 + $0x38] sm:$0xf0] %v492_v39 }
 0x139   :  { %v131_v17 = vpop.permute.xlu1 %130 }
 0x13a   :  { %v137_v20 = vsel %vm136_vm8, %v131_v17, %v133_v16  ;;  %v95_v45 = vpop.permute.xlu0 %94  ;;  %v645_v16 = vld [vmem:[#allocation3 + $0x78] sm:$0xff] }
 0x13b   :  { %141 = vst [vmem:[#allocation3] sm:$0xf0] %v137_v20  ;;  %v99_v46 = vsel %vm98_vm9, %v93_v5, %v95_v45  ;;  %v100_v42 = vsel %vm98_vm9, %v95_v45, %v97_v26  ;;  %v920_v34 = vpack.c.bf16 %v645_v16, %v641_v24 }
 0x13c   :  { %103 = vst [vmem:[#allocation3] sm:$0xf] %v99_v46  ;;  %104 = vst [vmem:[#allocation3 + $0x8] sm:$0xf] %v100_v42 }
 0x13d   :  { %v206_v47 = vpop.permute.xlu1 %205 }
 0x13e   :  { %v212_v48 = vsel %vm58_vm6, %v206_v47, %v208_v27  ;;  %v170_v49 = vpop.permute.xlu0 %169 }
 0x13f   :  { %216 = vst [vmem:[#allocation3 + $0x20] sm:$0xf0] %v212_v48  ;;  %v174_v50 = vsel %vm173_vm10, %v168_v1, %v170_v49  ;;  %v175_v52 = vsel %vm173_vm10, %v170_v49, %v172_v19 }
 0x140   :  { %178 = vst [vmem:[#allocation3 + $0x20] sm:$0xf] %v174_v50  ;;  %179 = vst [vmem:[#allocation3 + $0x28] sm:$0xf] %v175_v52 }
 0x141   :  { %v417_v53 = vpop.permute.xlu1 %416 }
 0x142   :  { %v422_v54 = vsel %vm136_vm8, %v417_v53, %v419_v33  ;;  %v384_v55 = vpop.permute.xlu0 %383  ;;  %v646_v33 = vld [vmem:[#allocation3 + $0x80] sm:$0xf] }
 0x143   :  { %426 = vst [vmem:[#allocation3 + $0x10] sm:$0xf0] %v422_v54  ;;  %v387_v56 = vsel %vm98_vm9, %v382_v37, %v384_v55  ;;  %v388_v57 = vsel %vm98_vm9, %v384_v55, %v386_v28  ;;  %v631_v10 = vld [vmem:[#allocation3 + $0x8] sm:$0xff]  ;;  %v630_v7 = vld [vmem:[#allocation3] sm:$0xff]  ;;  %v1026_v54 = vmov 0  }
 0x144   :  { %391 = vst [vmem:[#allocation3 + $0x10] sm:$0xf] %v387_v56  ;;  %392 = vst [vmem:[#allocation3 + $0x18] sm:$0xf] %v388_v57  ;;  %938 = vset.pattern.permute.xlu0 %v1026_v54  ;;  %939 = vset.pattern.permute.xlu1 %v1026_v54  ;;  %v808_v55 = vld [vmem:[#allocation4] sm:$0xff]  ;;  %v816_v57 = vld [vmem:[#allocation5] sm:$0xff] }
 0x145   :  { %v486_v58 = vpop.permute.xlu1 %485 }
 0x146   :  { %v491_v59 = vsel %vm58_vm6, %v486_v58, %v488_v35  ;;  %v453_v60 = vpop.permute.xlu0 %452  ;;  %v644_v35 = vld [vmem:[#allocation3 + $0x70] sm:$0xff] }
 0x147   :  { %495 = vst [vmem:[#allocation3 + $0x30] sm:$0xf0] %v491_v59  ;;  %v456_v23 = vsel %vm173_vm10, %v451_v40, %v453_v60  ;;  %v457_v63 = vsel %vm173_vm10, %v453_v60, %v455_v29  ;;  %v635_v0 = vld [vmem:[#allocation3 + $0x28] sm:$0xff]  ;;  %v634_v8 = vld [vmem:[#allocation3 + $0x20] sm:$0xff]  ;;  %v922_v44 = vpack.c.bf16 %v644_v35, %v640_v43 }
 0x148   :  { %460 = vst [vmem:[#allocation3 + $0x30] sm:$0xf] %v456_v23  ;;  %461 = vst [vmem:[#allocation3 + $0x38] sm:$0xf] %v457_v63  ;;  %v908_v9 = vpack.c.bf16 %v635_v0, %v631_v10  ;;  %v910_v11 = vpack.c.bf16 %v634_v8, %v630_v7 }
 0x149   :  { %v615_v12 = vpop.permute.xlu1 %614 }
 0x14a   :  { %v617_v13 = vrot.slane %v615_v12, 4  ;;  %909 = vmatprep.subr.bf16.mxu0 %v908_v9  ;;  %v613_v15 = vpop.permute.xlu0 %612  ;;  %v854_v9 = vld [vmem:[%s1355_s4] sm:$0xff] }
 0x14b   :  { %v616_v22 = vrot.slane %v613_v15, 4  ;;  %911 = vmatpush1.bf16.msra.mxu0 %v910_v11  ;;  %v633_v26 = vld [vmem:[#allocation3 + $0x18] sm:$0xff]  ;;  %v632_v28 = vld [vmem:[#allocation3 + $0x10] sm:$0xff] }
 0x14c   :  { %913 = vmatprep.subr.bf16.mxu0 %v912_v14 }
 0x14d   :  { %v618_v3 = vsel %vm52_vm0, %v616_v22, %v617_v13 }
 0x14e   :  { %v619_v25 = vsel %vm83_vm5, %v618_v3, %v615_v12 }
 0x14f   :  { %v623_v19 = vmul.f32 %v621_v21, %v619_v25  ;;  %915 = vmatpush1.bf16.msra.mxu0 %v914_v4  ;;  %v637_v27 = vld [vmem:[#allocation3 + $0x38] sm:$0xff]  ;;  %v636_v5 = vld [vmem:[#allocation3 + $0x30] sm:$0xff] }
 0x150   :  { %902 = vmatprep.subr.msk.mxu0 %vm52_vm0, %v647_v51  ;;  %v916_v29 = vpack.c.bf16 %v637_v27, %v633_v26  ;;  %v918_v1 = vpack.c.bf16 %v636_v5, %v632_v28 }
 0x151   :  { %v625_v30 = vcombine.high %v623_v19, %v623_v19  ;;  %627 = vst [vmem:[#allocation3 + $0x90] sm:$0xf] %v623_v19 }
 0x152   :  { %917 = vmatprep.subr.bf16.mxu1 %v916_v29 }
 0x153   :  { %628 = vst [vmem:[#allocation3 + $0x98] sm:$0xf] %v625_v30  ;;  %903 = vmatpush1.msk.msra.mxu0 %vm52_vm0, %v646_v33  ;;  %919 = vmatpush1.bf16.msra.mxu1 %v918_v1 }
 0x154   :  { %921 = vmatprep.subr.bf16.mxu1 %v920_v34  ;;  %904 = vmatmul.mubr.msk.f32.vlgmr.msra.gmra.mrb[0].mxu0 %vm650_vm11, %v629_v31 }
 0x157   :  { %923 = vmatpush1.bf16.msra.mxu1 %v922_v44 }
 0x158   :  { %v648_v37 = vld [vmem:[#allocation3 + $0x90] sm:$0xf] }
 0x15a   :  { %v649_v36 = vld [vmem:[#allocation3 + $0x98] sm:$0xf] }
 0x15b   :  { %905 = vmatprep.subr.msk.mxu1 %vm52_vm0, %v649_v36 }
 0x15c   :  { %906 = vmatpush1.msk.msra.mxu1 %vm52_vm0, %v648_v37 }
 0x15d   :  { %907 = vmatmul.mubr.msk.f32.vlgmr.msra.gmra.mrb[0].mxu1 %vm650_vm11, %v629_v31 }
 0x227   :  { %v732_v38 = vpop.f32.mrb[0].mxu0 }
 0x228   :  { %v817_v39 = vmul.f32 %v732_v38, %v732_v38  ;;  %v734_v40 = vpop.f32.mrb[1].mxu0 }
 0x229   :  { %v809_v17 = vadd.f32 %v734_v40, %v732_v38  ;;  %v818_v20 = vmul.f32 %v734_v40, %v734_v40 }
 0x22b   :  { %v821_v45 = vadd.f32 %v818_v20, %v817_v39 }
 0x230   :  { %v803_v46 = vpop.f32.mrb[0].mxu1 }
 0x231   :  { %v819_v42 = vmul.f32 %v803_v46, %v803_v46  ;;  %v805_v47 = vpop.f32.mrb[1].mxu1  ;;  %v810_v48 = vadd.f32 %v809_v17, %v803_v46 }
 0x232   :  { %v820_v49 = vmul.f32 %v805_v47, %v805_v47 }
 0x233   :  { %v811_v50 = vadd.f32 %v810_v48, %v805_v47  ;;  %v822_v52 = vadd.f32 %v821_v45, %v819_v42 }
 0x235   :  { %812 = vadd.xlane.f32.xlu0 %v811_v50  ;;  %v823_v53 = vadd.f32 %v822_v52, %v820_v49 }
 0x237   :  { %824 = vadd.xlane.f32.xlu1 %v823_v53 }
 0x2c2   :  { %v813_v56 = vpop.xlane.xlu0 %812 }
 0x2c3   :  { %v814_v41 = vadd.f32 %v813_v56, %v808_v55 }
 0x2c4   :  { %v825_v58 = vpop.xlane.xlu1 %824 }
 0x2c5   :  { %815 = vst.msk [vmem:[#allocation4] sm:$0xff] %vm58_vm6, %v814_v41  ;;  %v826_v59 = vadd.f32 %v825_v58, %v816_v57 }
 0x2c7   :  { %827 = vst.msk [vmem:[#allocation5] sm:$0xff] %vm58_vm6, %v826_v59 }
 0x2cc   :  { %v843_v60 = vld [vmem:[#allocation4] sm:$0xff] }
 0x2cd   :  { %v844_v10 = vmul.f32 0.001953125, %v843_v60 }
 0x2ce   :  { %v845_v61 = vld [vmem:[#allocation5] sm:$0xff] }
 0x2cf   :  { %v846_v62 = vmul.f32 0.001953125, %v845_v61  ;;  %v847_v23 = vmul.f32 %v844_v10, %v844_v10 }
 0x2d1   :  { %v848_v63 = vsub.f32 %v846_v62, %v847_v23 }
 0x2d3   :  { %v849_v0 = vmax.f32 %v848_v63, 0.0 }
 0x2d5   :  { %v851_v2 = vadd.f32 1e-05, %v849_v0 }
 0x2d7   :  { %940 = vrsqrt.f32 %v851_v2 }
 0x2e1   :  { %v941_v7 = vpop.eup %940 }
 0x2e2   :  { %v853_v8 = vmul.f32 %v941_v7, %v850_v6 }
 0x2e4   :  { %863 = vperm.xlu0 %938, %v853_v8   ;;  %v855_v11 = vmul.f32 %v853_v8, %v844_v10 }
 0x2e6   :  { %v856_v12 = vsub.f32 %v854_v9, %v855_v11 }
 0x2e8   :  { %872 = vperm.xlu1 %939, %v856_v12  }
 0x363   :  { %v864_v13 = vpop.permute.xlu0 %863 }
 0x364   :  { %v866_v15 = vmul.f32 %v864_v13, %v732_v38  ;;  %v867_v14 = vmul.f32 %v864_v13, %v734_v40  ;;  %v868_v32 = vmul.f32 %v864_v13, %v803_v46  ;;  %v869_v18 = vmul.f32 %v864_v13, %v805_v47 }
 0x367   :  { %v873_v21 = vpop.permute.xlu1 %872 }
 0x368   :  { %v875_v22 = vadd.f32 %v873_v21, %v866_v15  ;;  %v876_v3 = vadd.f32 %v873_v21, %v867_v14  ;;  %v877_v4 = vadd.f32 %v873_v21, %v868_v32  ;;  %v878_v24 = vadd.f32 %v873_v21, %v869_v18 }
 0x36a   :  { %879 = vst [vmem:[#allocation11] sm:$0xff] %v875_v22  ;;  %880 = vst [vmem:[#allocation11 + $0x8] sm:$0xff] %v876_v3 }
 0x36b   :  { %881 = vst [vmem:[#allocation11 + $0x10] sm:$0xff] %v877_v4  ;;  %882 = vst [vmem:[#allocation11 + $0x18] sm:$0xff] %v878_v24 }
 0x36c   :  { %997 = shalt.err (!%p994_p6)
}
 0x36d   :  { %s998_s9 = scalar_lea.hbm %s1356_s5, 512 }
 0x36e   :  { %p999_p7 = scmp.ne.s32.totalorder %s1356_s5, %s998_s9  ;;  %p1002_p8 = scmp.lt.u32.totalorder %s998_s9, %s1356_s5 }
 0x370   :  { %p1004_p9 = pnand %p1002_p8, %p999_p7 }
 0x372   :  { %1007 = shalt.err (!%p1004_p9)
}
 0x373   :  { %894 = dma.vmem_to_hbm [thread:$0]  %s889_s7, 512, %s1356_s5, [#allocation8], %s1016_s1, %s1016_s1, %s1017_s15  }
 0x374   :  { %1012 = dma.done.wait [#allocation8], 512  }
 0x375   :  { %1013 = vsyncadd [#allocation8], 4294966784 }
 0x376   :  { %898 = vsyncpa [#allocation7], 1 }
 0x377   :  { %899 = vsyncpa [#allocation10], 1 }
 0x378   :  { %900 = vsyncpa [#allocation8], 1 }

</bundles_post_ra>
